<compile_context>
chip_gen: v7x
topology: tpu7x:2x2x1
jax: 0.10.0
libtpu: 0.0.40
codegen_flags: <defaults>
</compile_context>

<pallas_src>
import jax
import jax.numpy as jnp
from jax import lax
from jax.experimental import pallas as pl
from jax.experimental.pallas import tpu as pltpu


def _linear1x1_kernel(x_ref, w_ref, b_ref, o_ref):
    # x_ref: (1, C_in, TK)   w_ref: (C_out, C_in)   b_ref: (C_out, 1)
    # o_ref: (1, C_out, TK)
    x = x_ref[0]                      # (C_in, TK), native dtype (no full-tile cast)
    w = w_ref[...]                    # (C_out, C_in), native dtype
    acc = lax.dot_general(            # MXU: (C_out, C_in) . (C_in, TK) -> (C_out, TK)
        w, x,
        dimension_numbers=(((1,), (0,)), ((), ())),
        preferred_element_type=jnp.float32,
    )
    acc = acc + b_ref[...].astype(jnp.float32)   # broadcast (C_out, 1) over lanes
    o_ref[0] = acc.astype(o_ref.dtype)


def linear_forward(x, weight, bias):
    """1x1 Conv2d forward.

    x:      (B, C_in, N, T)
    weight: (C_out, C_in)   (Conv2d weight squeezed from (C_out, C_in, 1, 1))
    bias:   (C_out,)
    returns (B, C_out, N, T)
    """
    B, C_in, N, T = x.shape
    C_out, C_in_w = weight.shape
    assert C_in_w == C_in
    assert bias.shape == (C_out,)

    # Flatten (N, T) -> lane-dense K.  No padding, no post-slice.
    K = N * T
    x2 = x.reshape(B, C_in, K)
    bias2 = bias.reshape(C_out, 1)

    dtype_bytes = jnp.dtype(x.dtype).itemsize

    # ---- K tile size from the real per-step VMEM footprint --------------
    # Budget: 16 MiB for the pipelined tiles (half of v7x's 32 MiB default
    # scoped VMEM, the tightest generation; v5e/v6e have more headroom).
    VMEM_TILE_BUDGET = 16 * 1024 * 1024
    bytes_per_lane = 2 * (C_in + C_out) * dtype_bytes        # double-buffered x + out
    if x.dtype != jnp.float32:
        bytes_per_lane += C_out * 4                          # f32 accumulator tile
    tk_cap = (VMEM_TILE_BUDGET // max(bytes_per_lane, 1)) // 128 * 128
    tk_cap = max(512, tk_cap)                                # never fall to the
                                                             # 128-lane perf cliff
    k_round = pl.cdiv(K, 128) * 128                          # lane-dense cover of K
    tk = min(tk_cap, k_round)                                # whole-K tile if it fits
    num_k = pl.cdiv(K, tk)

    # v7x megacore: keep at least 2 parallel grid steps in total so both
    # TensorCores get work (no-op on v5e/v6e which have 1 TC).
    if B * num_k < 2 and k_round > 128:
        tk = max(128, pl.cdiv(pl.cdiv(K, 2), 128) * 128)
        num_k = pl.cdiv(K, tk)

    grid = (B, num_k)

    # VMEM limit sized from the actual footprint (with 2x headroom), capped at
    # v7x's 32 MiB default scoped limit so it is valid on every generation.
    per_step = (2 * (C_in + C_out) * tk * dtype_bytes
                + (C_out * tk * 4 if x.dtype != jnp.float32 else 0)
                + C_out * (C_in + 1) * dtype_bytes)
    vmem_limit = int(min(32 * 1024 * 1024, max(8 * 1024 * 1024, 2 * per_step)))

    out2 = pl.pallas_call(
        _linear1x1_kernel,
        out_shape=jax.ShapeDtypeStruct((B, C_out, K), x.dtype),
        grid_spec=pltpu.PrefetchScalarGridSpec(
            num_scalar_prefetch=0,
            grid=grid,
            in_specs=[
                pl.BlockSpec((1, C_in, tk), lambda b, k: (b, 0, k)),
                pl.BlockSpec((C_out, C_in), lambda b, k: (0, 0)),   # resident weight
                pl.BlockSpec((C_out, 1), lambda b, k: (0, 0)),      # resident bias
            ],
            out_specs=pl.BlockSpec((1, C_out, tk), lambda b, k: (b, 0, k)),
        ),
        compiler_params=pltpu.CompilerParams(
            dimension_semantics=("parallel", "parallel"),
            vmem_limit_bytes=vmem_limit,
        ),
    )(x2, weight, bias2)

    return out2.reshape(B, C_out, N, T)


if __name__ == "__main__":
    key = jax.random.PRNGKey(0)
    kx, kw, kb = jax.random.split(key, 3)

    # batch=2, c_in=4, spatial N=16, seq T=8, c_out (hidden)=32
    B, C_in, C_out, N, T = 2, 4, 32, 16, 8
    x = jax.random.normal(kx, (B, C_in, N, T), dtype=jnp.float32)
    w = jax.random.normal(kw, (C_out, C_in), dtype=jnp.float32) * 0.1
    b = jax.random.normal(kb, (C_out,), dtype=jnp.float32)

    out = linear_forward(x, w, b)
    jax.block_until_ready(out)

    # Reference: exactly what Conv2d(c_in, c_out, kernel=(1,1), bias=True) does.
    ref = jnp.einsum("oc,bcnt->bont", w, x) + b[None, :, None, None]
    assert out.shape == (B, C_out, N, T)
    assert jnp.allclose(out, ref, atol=1e-4, rtol=1e-4)

    # Ragged-K check (N*T not a multiple of 128): exercises the no-pad
    # masked-tail-block path introduced in this version.
    N2, T2 = 16, 12                      # K = 192
    x_r = jax.random.normal(kx, (B, C_in, N2, T2), dtype=jnp.float32)
    out_r = linear_forward(x_r, w, b)
    jax.block_until_ready(out_r)
    ref_r = jnp.einsum("oc,bcnt->bont", w, x_r) + b[None, :, None, None]
    assert out_r.shape == (B, C_out, N2, T2)
    assert jnp.allclose(out_r, ref_r, atol=1e-4, rtol=1e-4)

    print("KERNEL_OK")
</pallas_src>

<mosaic_0001>
module attributes {stable_mosaic.version = 11 : i64} {
  func.func @_linear1x1_kernel(%arg0: i32, %arg1: i32, %arg2: memref<1x4x128xf32, #tpu.memory_space<vmem>>, %arg3: memref<32x4xf32, #tpu.memory_space<vmem>>, %arg4: memref<32x1xf32, #tpu.memory_space<vmem>>, %arg5: memref<1x32x128xf32, #tpu.memory_space<vmem>>) attributes {dimension_semantics = [#tpu.dimension_semantics<parallel>, #tpu.dimension_semantics<parallel>], iteration_bounds = array<i64: 2, 1>, scalar_prefetch = 0 : i64, scratch_operands = 0 : i64, tpu.core_type = #tpu.core_type<tc>, window_params = [{transform_indices = @transform_0, window_bounds = array<i64: 1, 4, 128>}, {pipeline_mode = #tpu.pipeline_mode<synchronous>, transform_indices = @transform_1, window_bounds = array<i64: 32, 4>}, {pipeline_mode = #tpu.pipeline_mode<synchronous>, transform_indices = @transform_2, window_bounds = array<i64: 32, 1>}, {transform_indices = @transform_3, window_bounds = array<i64: 1, 32, 128>}]} {
    %c0 = arith.constant 0 : index
    %c0_0 = arith.constant 0 : index
    %c0_1 = arith.constant 0 : index
    %0 = vector.load %arg2[%c0, %c0_0, %c0_1] : memref<1x4x128xf32, #tpu.memory_space<vmem>>, vector<1x4x128xf32>
    %1 = vector.shape_cast %0 : vector<1x4x128xf32> to vector<4x128xf32>
    %c0_2 = arith.constant 0 : index
    %c0_3 = arith.constant 0 : index
    %2 = vector.load %arg3[%c0_2, %c0_3] : memref<32x4xf32, #tpu.memory_space<vmem>>, vector<32x4xf32>
    %cst = arith.constant dense<0.000000e+00> : vector<32x128xf32>
    %3 = tpu.matmul %2, %1, %cst {dimension_numbers = #tpu.dot_dimension_numbers<[1], [0], [0], [1], [0, 0, 1, 1], [], []>} : vector<32x4xf32>, vector<4x128xf32>, vector<32x128xf32> -> vector<32x128xf32>
    %c0_4 = arith.constant 0 : index
    %c0_5 = arith.constant 0 : index
    %4 = vector.load %arg4[%c0_4, %c0_5] : memref<32x1xf32, #tpu.memory_space<vmem>>, vector<32x1xf32>
    %5 = vector.broadcast %4 : vector<32x1xf32> to vector<32x128xf32>
    %6 = arith.addf %3, %5 : vector<32x128xf32>
    %c0_6 = arith.constant 0 : index
    %c0_7 = arith.constant 0 : index
    %c0_8 = arith.constant 0 : index
    %7 = vector.load %arg5[%c0_6, %c0_7, %c0_8] : memref<1x32x128xf32, #tpu.memory_space<vmem>>, vector<1x32x128xf32>
    %8 = vector.shape_cast %7 : vector<1x32x128xf32> to vector<32x128xf32>
    %9 = vector.shape_cast %6 : vector<32x128xf32> to vector<1x32x128xf32>
    tpu.vector_store %arg5[%c0_6, %c0_7, %c0_8], %9 {strides = array<i32>} : memref<1x32x128xf32, #tpu.memory_space<vmem>>, vector<1x32x128xf32>,
    return
  }
  func.func @transform_0(%arg0: i32, %arg1: i32) -> (i32, i32, i32) {
    %c0_i32 = arith.constant 0 : i32
    %c0_i32_0 = arith.constant 0 : i32
    return %arg0, %c0_i32, %arg1 : i32, i32, i32
  }
  func.func @transform_1(%arg0: i32, %arg1: i32) -> (i32, i32) {
    %c0_i32 = arith.constant 0 : i32
    %c0_i32_0 = arith.constant 0 : i32
    %c0_i32_1 = arith.constant 0 : i32
    return %c0_i32, %c0_i32_0 : i32, i32
  }
  func.func @transform_2(%arg0: i32, %arg1: i32) -> (i32, i32) {
    %c0_i32 = arith.constant 0 : i32
    %c0_i32_0 = arith.constant 0 : i32
    %c0_i32_1 = arith.constant 0 : i32
    return %c0_i32, %c0_i32_0 : i32, i32
  }
  func.func @transform_3(%arg0: i32, %arg1: i32) -> (i32, i32, i32) {
    %c0_i32 = arith.constant 0 : i32
    %c0_i32_0 = arith.constant 0 : i32
    return %arg0, %c0_i32, %arg1 : i32, i32, i32
  }
}

</mosaic_0001>

<bundles_post_ra>
// kernel: tpu_custom_call.1
= control target key start
LH: loop header
LB: loop body
LE: loop exit
PB: predicated region body
PF: predicated region fallthrough
CT: control target
= control target key end

     0   :  { %8 = vsyncpa [#allocation3], 0  ;;  %s756_s0 = inlined_call_operand.vmem [shape: f32[2,4,128], index: 0, kind: input, shape index: {}]   ;;  %s757_s1 = inlined_call_operand.vmem [shape: f32[32,4], index: 1, kind: input, shape index: {}]   ;;  %s758_s2 = inlined_call_operand.vmem [shape: f32[32,1], index: 2, kind: input, shape index: {}]   ;;  %s759_s3 = inlined_call_operand.hbm [shape: f32[2,32,128], index: 3, kind: output, shape index: {}]  }
   0x1   :  { %10 = vsyncpa [#allocation3 + $0x1], 0  ;;  %s613_s12 = smov 0   ;;  %s615_s13 = smov 0  }
   0x2   :  { %s617_s14 = smov 0   ;;  %s619_s15 = smov 0  }
   0x3   :  { %s621_s16 = smov 0   ;;  %s623_s17 = smov 0  }
   0x4 LB: > { %s416_s18 = sadd.s32 4294967295, %s587_s17   ;;  %s417_s19 = sadd.s32 4294967294, %s587_s17   ;;  %s587_s17 = sphi %s623_s17, %s16_s17   ;;  %s583_s16 = sphi %s621_s16, %s766_s16   ;;  %s579_s15 = sphi %s619_s15, %s765_s15   ;;  %s575_s14 = sphi %s617_s14, %s764_s14   ;;  %s571_s13 = sphi %s615_s13, %s763_s13   ;;  %s567_s12 = sphi %s613_s12, %s762_s12  }
   0x5   : > { %s28_s20 = sadd.s32 1, %s583_s16  ;;  %s107_s21 = sadd.s32 1, %s575_s14 }
   0x6   : > { %p30_p0 = scmp.ge.s32.totalorder %s28_s20, 2  ;;  %p117_p1 = scmp.ne.s32.totalorder %s575_s14, %s571_s13 }
   0x7   : > { %p118_p2 = scmp.eq.s32.totalorder %s416_s18, 1  ;;  %p123_p3 = scmp.ne.s32.totalorder %s571_s13, %s567_s12 }
   0x8   : > { %s768_s20 = smov (%p30_p0, %s28_s20), 0  ;;  %p124_p5 = scmp.eq.s32.totalorder %s417_s19, 1 }
   0x9   : > { %p653_p4 = por %p118_p2, %p117_p1  ;;  %s102_s23 = ssub.s32 %s583_s16, %s768_s20 }
   0xa   : > { %p420_p6 = scmp.ge.s32.totalorder %s587_s17, 1  ;;  %p105_p7 = scmp.eq.s32.totalorder %s102_s23, 0 }
   0xb   : > { %p660_p8 = por %p124_p5, %p123_p3  ;;  %p158_p9 = scmp.lt.s32.totalorder %s587_s17, 3 }
   0xc   : > { %s666_s25 = scalar_select %p105_p7, %s575_s14, %s107_s21  }
   0xd   : > { %p159_p10 = pnand %p420_p6, %p158_p9 }
   0xe   : > { %p184_p11 = scmp.lt.s32.totalorder (!%p159_p10), %s579_s15, 1  ;;  %v192_v0 = vld [vmem:[%s757_s1] sm:$0xff] (!%p159_p10)  ;;  %vm220_vm0 = vcmask (!%p159_p10), 31744   ;;  %v194_v1 = vld [vmem:[%s757_s1 + $0x10] sm:$0xff] (!%p159_p10)  ;;  %v589_v4 = vmov (!%p159_p10), 0   ;;  %vm233_vm1 = vcmask (!%p159_p10), 1043456  }
   0xf   : > { %162 = sbr.rel (%p159_p10) target bundleno = 259 (0x103), region = 32  ;;  %441 = vmatprep.mubr.msk.f32.mxu0 (!%p159_p10), %vm220_vm0, %v192_v0  ;;  %444 = vmatprep.mubr.msk.f32.mxu1 (!%p159_p10), %vm220_vm0, %v194_v1  ;;  %v198_v2 = vld [vmem:[%s758_s2 + $0x10] sm:$0xff] (!%p159_p10)  ;;  %v196_v3 = vld [vmem:[%s758_s2] sm:$0xff] (!%p159_p10)  ;;  %v193_v6 = vld [vmem:[%s757_s1 + $0x8] sm:$0xff] (!%p159_p10)  ;;  %s181_s30 = sand.u32 (!%p159_p10), 1, %s571_s13  }
  0x10   : > { %508 = vset.pattern.permute.xlu1 (!%p159_p10), %v589_v4  ;;  %507 = vset.pattern.permute.xlu0 (!%p159_p10), %v589_v4  ;;  %v195_v7 = vld [vmem:[%s757_s1 + $0x18] sm:$0xff] (!%p159_p10)  ;;  %v197_v9 = vld [vmem:[%s758_s2 + $0x8] sm:$0xff] (!%p159_p10)  ;;  %s421_s4 = sshll.u32 (!%p159_p10), %s181_s30, 5  ;;  %s590_s18 = smov (!%p159_p10), [#allocation2]  }
  0x11   : > { %212 = vperm.xlu1 (!%p159_p10), %508, %v198_v2   ;;  %202 = vperm.xlu0 (!%p159_p10), %507, %v196_v3   ;;  %v199_v8 = vld [vmem:[%s758_s2 + $0x18] sm:$0xff] (!%p159_p10)  ;;  %s183_s5 = scalar_lea.vmem (!%p159_p10), [#allocation2], %s421_s4  ;;  %s513_s19 = sshll.u32 (!%p159_p10), %s590_s18, 4  ;;  %s514_s19 = int_to_ptr.vmem [resolvable:$false] %s513_s19 }
  0x12   : > { %s341_s6 = sshll.u32 (!%p159_p10), %s183_s5, 4  ;;  %s515_s21 = scalar_lea.vmem (!%p159_p10), %s514_s19, 1024  ;;  %s703_s6 = int_to_ptr.vmem [resolvable:$true] %s341_s6 }
  0x13   : > { %p516_p1 = scmp.lt.s32.totalorder (!%p159_p10), %s703_s6, %s514_s19 }
  0x15   : > { %217 = vperm.xlu1 (!%p159_p10), %508, %v199_v8   ;;  %207 = vperm.xlu0 (!%p159_p10), %507, %v197_v9  }
  0x16   : > { %s185_s7 = scalar_select %p184_p11, %s579_s15, 1 }
  0x18   : > { %s422_s8 = sshll.u32 %s185_s7, 2  ;;  %s433_s7 = sshll.u32 %s579_s15, 9 }
  0x19   : > { %s190_s11 = scalar_lea.vmem %s756_s0, %s422_s8  ;;  %s708_s10 = scalar_lea.hbm %s759_s3, %s433_s7 }
  0x1a   : > { %v191_v5 = vld [vmem:[%s190_s11] sm:$0xf]  ;;  %s710_s15 = scalar_lea.sflag [#allocation3], %s181_s30  ;;  %s509_s11 = scalar_lea.vmem %s703_s6, 512 }
  0x1b   : > { %439 = vmatprep.subr.msk.mxu0 %vm233_vm1, %v191_v5  ;;  %447 = vmatprep.subr.msk.mxu1 %vm233_vm1, %v191_v5  ;;  %p510_p12 = scmp.ne.s32.totalorder %s703_s6, %s509_s11  ;;  %p517_p2 = scmp.lt.s32.totalorder %s515_s21, %s509_s11 }
  0x1c   : > { %440 = vmatpush3.msk.msra.mxu0 %vm233_vm1, %v191_v5  ;;  %448 = vmatpush3.msk.msra.mxu1 %vm233_vm1, %v191_v5 }
  0x1d   : > { %442 = vmatmul.mubr.msk.f32.vlgmr.msra.gmra.mrb[0].mxu0 %vm220_vm0, %v193_v6  ;;  %445 = vmatmul.mubr.msk.f32.vlgmr.msra.gmra.mrb[0].mxu1 %vm220_vm0, %v195_v7  ;;  %p511_p13 = pnand %p510_p12, %p653_p4  ;;  %p518_p3 = por %p517_p2, %p516_p1 }
  0x1f   : > { %p512_p0 = pneg %p511_p13 }
  0x21   : > { %p519_p5 = pnand %p518_p3, %p512_p0 }
  0x90   : > { %v213_v10 = vpop.permute.xlu1 %212  ;;  %v203_v11 = vpop.permute.xlu0 %202 }
  0x94   : > { %v218_v12 = vpop.permute.xlu1 %217  ;;  %v208_v13 = vpop.permute.xlu0 %207 }
  0xf0   : > { %v443_v14 = vpop.f32.mrb[0].mxu0  ;;  %v446_v15 = vpop.f32.mrb[0].mxu1 }
  0xf1   : > { %v309_v16 = vadd.f32 %v443_v14, %v208_v13  ;;  %v319_v17 = vadd.f32 %v446_v15, %v218_v12  ;;  %v303_v18 = vpop.f32.mrb[1].mxu0  ;;  %v313_v19 = vpop.f32.mrb[1].mxu1 }
  0xf2   : > { %v304_v20 = vadd.f32 %v303_v18, %v203_v11  ;;  %v314_v21 = vadd.f32 %v313_v19, %v213_v10 }
  0xf3   : > { %323 = vst [vmem:[%s183_s5 + $0x8] sm:$0xff] %v309_v16  ;;  %325 = vst [vmem:[%s183_s5 + $0x18] sm:$0xff] %v319_v17 }
  0xf4   : > { %322 = vst [vmem:[%s183_s5] sm:$0xff] %v304_v20  ;;  %324 = vst [vmem:[%s183_s5 + $0x10] sm:$0xff] %v314_v21 }
  0xf5   : > { %522 = shalt.err (!%p519_p5)
}
  0xf6   : > { %s523_s23 = scalar_lea.hbm %s708_s10, 512  ;;  %s527_s28 = scalar_lea.hbm %s759_s3, 1024 }
  0xf7   : > { %p524_p6 = scmp.ne.s32.totalorder %s708_s10, %s523_s23  ;;  %p528_p10 = scmp.lt.u32.totalorder %s708_s10, %s759_s3 }
  0xf8   : > { %p529_p11 = scmp.lt.u32.totalorder %s527_s28, %s523_s23  ;;  %p531_p13 = scmp.lt.u32.totalorder %s523_s23, %s708_s10 }
  0xf9   : > { %p525_p7 = pnand %p524_p6, %p653_p4 }
  0xfa   : > { %p530_p12 = por %p529_p11, %p528_p10 }
  0xfb   : > { %p526_p9 = pneg %p525_p7 }
  0xfc   : > { %p532_p0 = por %p531_p13, %p530_p12 }
  0xfe   : > { %p533_p1 = pnand %p532_p0, %p526_p9 }
 0x100   : > { %536 = shalt.err (!%p533_p1)
}
 0x101   : > { %s591_s4 = smov 128   ;;  %s592_s5 = smov 8  }
 0x102   : > { %449 = dma.vmem_to_hbm [thread:$0]  (%p653_p4), %s703_s6, 512, %s708_s10, %s710_s15, %s591_s4, %s591_s4, %s592_s5  }
 0x103 PF: > { %p455_p2 = scmp.ge.s32.totalorder %s587_s17, 2  ;;  %s356_s7 = sand.u32 1, %s567_s12  }
 0x104   : > { %s357_s8 = scalar_lea.sflag [#allocation3], %s356_s7 }
 0x105   : > { %p452_p3 = pnand %p455_p2, %p660_p8 }
 0x107   : > { %562 = dma.done.wait (!%p452_p3), %s357_s8, 512  }
 0x108   : > { %564 = vsyncadd (!%p452_p3), %s357_s8, 4294966784  ;;  %s16_s17 = sadd.s32 1, %s587_s17   ;;  %s762_s12 = smov %s571_s13 }
 0x109   : > { %p13_p5 = scmp.ge.s32.totalorder %s16_s17, 4   ;;  %s763_s13 = smov %s575_s14 }
 0x10a   : > { %s764_s14 = smov %s666_s25  ;;  %s765_s15 = smov %s583_s16 }
 0x10b   : > { %s766_s16 = smov %s768_s20  ;;  %15 = sbr.rel (!%p13_p5) target bundleno = 4 (0x4), region = 67 }
 0x112   :  { %362 = vsyncpa [#allocation3], 1 }
 0x113   :  { %364 = vsyncpa [#allocation3 + $0x1], 1 }

</bundles_post_ra>
